<compile_context>
chip_gen: v7x
topology: tpu7x:2x2x1
jax: 0.10.0
libtpu: 0.0.40
codegen_flags: <defaults>
</compile_context>

<pallas_src>
import functools

import numpy as np
import jax
import jax.numpy as jnp
from jax import lax
from jax.experimental import pallas as pl
from jax.experimental.pallas import tpu as pltpu

EPS = float(np.finfo(np.float32).eps)


# ----------------------------------------------------------------------------- kernels

def _norm_qkv_kernel(x_ref, gain_ref, wq_ref, wk_ref, wv_ref,
                     q_ref, k_ref, v_ref, *, scale, eps):
    """RMSNorm followed by the three QKV projections, fused (one pass over x)."""
    x = x_ref[...]                                   # (N, D)
    g = gain_ref[...]                                # (1, D)
    norm = jnp.sqrt(jnp.sum(x * x, axis=-1, keepdims=True))
    xn = (scale * g) * x / (norm + eps)
    q_ref[...] = jnp.dot(xn, wq_ref[...], preferred_element_type=jnp.float32).astype(q_ref.dtype)
    k_ref[...] = jnp.dot(xn, wk_ref[...], preferred_element_type=jnp.float32).astype(k_ref.dtype)
    v_ref[...] = jnp.dot(xn, wv_ref[...], preferred_element_type=jnp.float32).astype(v_ref.dtype)


def _attn_kernel(q_ref, k_ref, v_ref, cos_ref, sins_ref, o_ref, *, sm_scale):
    """RoPE (roll + sign-folded sin) + causal softmax attention for all heads of one batch."""
    H, S, Dh = q_ref.shape                           # leading batch dim is squeezed away
    cos = cos_ref[...]                               # (S, Dh)
    sins = sins_ref[...]                             # (S, Dh), sign already folded in

    def rope(x):                                     # x: (H, S, Dh)
        x_rot = pltpu.roll(x, shift=Dh // 2, axis=2)  # XLU lane roll, replaces slice+concat
        return x * cos + x_rot * sins                 # (S,Dh) broadcasts over heads

    q = rope(q_ref[...])
    k = rope(k_ref[...])
    v = v_ref[...]

    s = jnp.einsum('hqd,hkd->hqk', q, k,
                   preferred_element_type=jnp.float32) * sm_scale     # (H, S, S)

    row = lax.broadcasted_iota(jnp.int32, (S, S), 0)
    col = lax.broadcasted_iota(jnp.int32, (S, S), 1)
    causal = (col > row)[None, :, :]                  # (1, S, S)
    s = jnp.where(causal, -jnp.inf, s)

    s_max = jnp.max(s, axis=-1, keepdims=True)
    p = jnp.exp(s - s_max)
    p = p / jnp.sum(p, axis=-1, keepdims=True)

    o_ref[...] = jnp.einsum('hqk,hkd->hqd', p, v,
                            preferred_element_type=jnp.float32).astype(o_ref.dtype)


def _proj_res_kernel(attn_ref, wo_ref, res_ref, o_ref):
    """out = residual + attn @ Wo."""
    o_ref[...] = (res_ref[...] +
                  jnp.dot(attn_ref[...], wo_ref[...],
                          preferred_element_type=jnp.float32)).astype(o_ref.dtype)


def _norm_ffn_res_kernel(x_ref, gain_ref, w1_ref, wg1_ref, bg1_ref,
                         wg2_ref, bg2_ref, w2_ref, o_ref, *, scale, eps):
    """out = x + FFN(RMSNorm(x)), FFN = Linear -> SwiGLU -> Linear, fully fused.

    The SwiGLU's (H, 2H) weight is pre-split into two (H, H) halves in the wrapper so
    no lane slicing happens inside the kernel.
    """
    x = x_ref[...]                                   # (N, D)
    g = gain_ref[...]                                # (1, D)
    norm = jnp.sqrt(jnp.sum(x * x, axis=-1, keepdims=True))
    xn = (scale * g) * x / (norm + eps)

    h = jnp.dot(xn, w1_ref[...], preferred_element_type=jnp.float32)      # (N, Hf)
    a = jnp.dot(h, wg1_ref[...], preferred_element_type=jnp.float32) + bg1_ref[...]
    b = jnp.dot(h, wg2_ref[...], preferred_element_type=jnp.float32) + bg2_ref[...]
    swi = a * jax.nn.sigmoid(a) + b                                        # silu(a) + b

    o_ref[...] = (x + jnp.dot(swi, w2_ref[...],
                              preferred_element_type=jnp.float32)).astype(o_ref.dtype)


# ----------------------------------------------------------------------------- wrapper

def make_rope_tables(seq_len, dim_head, base=10000, eps=EPS):
    """Deterministic RoPE tables (matches the PyTorch module's __init__).

    Returns (cos, sin, sin_signed): `sin_signed` has the rotate_half sign folded in so the
    kernel can compute  x*cos + roll(x, Dh/2)*sin_signed .
    """
    idx = jnp.arange(seq_len, dtype=jnp.float32)
    scale = 1.0 / (base ** (jnp.arange(0, dim_head, 2, dtype=jnp.float32) / dim_head) + eps)
    position = jnp.outer(idx, scale)                          # (S, Dh/2)
    position = jnp.concatenate((position, position), axis=-1)  # (S, Dh)
    cos = jnp.cos(position)
    sin = jnp.sin(position)
    half = dim_head // 2
    sin_signed = jnp.concatenate((-sin[:, :half], sin[:, half:]), axis=-1)
    return cos, sin, sin_signed


def _full_spec(shape):
    n = len(shape)
    return pl.BlockSpec(shape, lambda *_: (0,) * n)


def transformer_block(x, params, cos, sin_signed):
    """x: (B, S, D) float32 -> (B, S, D). Forward pass of the PyTorch TransformerBlock."""
    B, S, D = x.shape
    H = params["num_heads"]
    dh = D // H
    HF = params["w1"].shape[1]
    N = B * S
    f32 = jnp.float32

    x2 = x.reshape(N, D)
    gain_attn = params["gain_attn"].reshape(1, D)
    gain_ffn = params["gain_ffn"].reshape(1, D)
    bg1 = params["bg1"].reshape(1, HF)
    bg2 = params["bg2"].reshape(1, HF)

    rms_scale = float(D) ** 0.5
    arbitrary1 = pltpu.CompilerParams(dimension_semantics=("arbitrary",))

    # ---- 1) RMSNorm + QKV projection (one fused grid step over the whole slab) ----
    q, k, v = pl.pallas_call(
        functools.partial(_norm_qkv_kernel, scale=rms_scale, eps=EPS),
        grid=(1,),
        in_specs=[_full_spec((N, D)), _full_spec((1, D)),
                  _full_spec((D, D)), _full_spec((D, D)), _full_spec((D, D))],
        out_specs=[_full_spec((N, D)), _full_spec((N, D)), _full_spec((N, D))],
        out_shape=[jax.ShapeDtypeStruct((N, D), f32)] * 3,
        compiler_params=arbitrary1,
    )(x2, gain_attn, params["wq"], params["wk"], params["wv"])

    # head split: (N, D) -> (B, H, S, dh)   (layout plumbing in the wrapper, like the spec)
    def split_heads(t):
        return t.reshape(B, S, H, dh).transpose(0, 2, 1, 3)

    qh, kh, vh = split_heads(q), split_heads(k), split_heads(v)

    # ---- 2) RoPE + causal attention, all heads per batch element per grid step ----
    head_spec = pl.BlockSpec((None, H, S, dh), lambda b: (b, 0, 0, 0))
    tbl_spec = pl.BlockSpec((S, dh), lambda b: (0, 0))
    attn = pl.pallas_call(
        functools.partial(_attn_kernel, sm_scale=float(D) ** -0.5),   # dim_k = dim_emb
        grid=(B,),
        in_specs=[head_spec, head_spec, head_spec, tbl_spec, tbl_spec],
        out_specs=head_spec,
        out_shape=jax.ShapeDtypeStruct((B, H, S, dh), f32),
        compiler_params=pltpu.CompilerParams(dimension_semantics=("parallel",)),
    )(qh, kh, vh, cos, sin_signed)

    attn2 = attn.transpose(0, 2, 1, 3).reshape(N, D)

    # ---- 3) output projection + first residual ----
    x_attn = pl.pallas_call(
        _proj_res_kernel,
        grid=(1,),
        in_specs=[_full_spec((N, D)), _full_spec((D, D)), _full_spec((N, D))],
        out_specs=_full_spec((N, D)),
        out_shape=jax.ShapeDtypeStruct((N, D), f32),
        compiler_params=arbitrary1,
    )(attn2, params["wo"], x2)

    # ---- 4) RMSNorm + FFN(SwiGLU) + second residual ----
    out = pl.pallas_call(
        functools.partial(_norm_ffn_res_kernel, scale=rms_scale, eps=EPS),
        grid=(1,),
        in_specs=[_full_spec((N, D)), _full_spec((1, D)), _full_spec((D, HF)),
                  _full_spec((HF, HF)), _full_spec((1, HF)),
                  _full_spec((HF, HF)), _full_spec((1, HF)), _full_spec((HF, D))],
        out_specs=_full_spec((N, D)),
        out_shape=jax.ShapeDtypeStruct((N, D), f32),
        compiler_params=arbitrary1,
    )(x_attn, gain_ffn, params["w1"], params["wg1"], bg1,
      params["wg2"], bg2, params["w2"])

    return out.reshape(B, S, D)


# ----------------------------------------------------------------------------- reference

def _reference(x, p, cos, sin):
    """Pure-JAX mirror of the PyTorch TransformerBlock (canonical rotate_half, unfolded sin)."""
    P = lax.Precision.HIGHEST
    B, S, D = x.shape
    H = p["num_heads"]
    dh = D // H

    def rmsnorm(t, gain):
        norm = jnp.sqrt(jnp.sum(t * t, axis=-1, keepdims=True))
        return ((D ** 0.5) * gain) * t / (norm + EPS)

    def rope(t):  # (B, H, S, dh)
        t1, t2 = t[..., : dh // 2], t[..., dh // 2:]
        t_rot = jnp.concatenate((-t2, t1), axis=-1)
        return t * cos[None, None] + t_rot * sin[None, None]

    xn = rmsnorm(x, p["gain_attn"])
    q = jnp.dot(xn, p["wq"], precision=P)
    k = jnp.dot(xn, p["wk"], precision=P)
    v = jnp.dot(xn, p["wv"], precision=P)

    def heads(t):
        return t.reshape(B, S, H, dh).transpose(0, 2, 1, 3)

    qh, kh, vh = rope(heads(q)), rope(heads(k)), heads(v)
    s = jnp.einsum("bhqd,bhkd->bhqk", qh, kh, precision=P) * (D ** -0.5)
    mask = jnp.triu(jnp.ones((S, S), dtype=bool), k=1)
    s = jnp.where(mask[None, None], -jnp.inf, s)
    a = jax.nn.softmax(s, axis=-1)
    o = jnp.einsum("bhqk,bhkd->bhqd", a, vh, precision=P)
    o = o.transpose(0, 2, 1, 3).reshape(B, S, D)
    x = x + jnp.dot(o, p["wo"], precision=P)

    xn2 = rmsnorm(x, p["gain_ffn"])
    h = jnp.dot(xn2, p["w1"], precision=P)
    ga = jnp.dot(h, p["wg1"], precision=P) + p["bg1"]
    gb = jnp.dot(h, p["wg2"], precision=P) + p["bg2"]
    swi = ga * jax.nn.sigmoid(ga) + gb
    x = x + jnp.dot(swi, p["w2"], precision=P)
    return x


# ----------------------------------------------------------------------------- main

if __name__ == "__main__":
    B, S, D, H, HF = 2, 8, 32, 4, 64     # batch, seq, dim_emb, heads, ffn_hidden
    dh = D // H

    key = jax.random.PRNGKey(0)
    keys = jax.random.split(key, 13)

    def init(k, shape, fan_in):
        return (jax.random.normal(k, shape, jnp.float32) / np.sqrt(fan_in)).astype(jnp.float32)

    params = dict(
        num_heads=H,
        gain_attn=(1.0 + 0.1 * jax.random.normal(keys[0], (D,), jnp.float32)),
        gain_ffn=(1.0 + 0.1 * jax.random.normal(keys[1], (D,), jnp.float32)),
        wq=init(keys[2], (D, D), D),
        wk=init(keys[3], (D, D), D),
        wv=init(keys[4], (D, D), D),
        wo=init(keys[5], (D, D), D),
        w1=init(keys[6], (D, HF), D),
        wg1=init(keys[7], (HF, HF), HF),
        wg2=init(keys[8], (HF, HF), HF),
        bg1=init(keys[9], (HF,), HF),
        bg2=init(keys[10], (HF,), HF),
        w2=init(keys[11], (HF, D), HF),
    )
    x = jax.random.normal(keys[12], (B, S, D), jnp.float32)

    cos_tbl, sin_tbl, sin_signed_tbl = make_rope_tables(S, dh)

    out = transformer_block(x, params, cos_tbl, sin_signed_tbl)
    out = jax.block_until_ready(out)

    ref = _reference(x, params, cos_tbl, sin_tbl)
    np.testing.assert_allclose(np.asarray(out), np.asarray(ref), rtol=2e-3, atol=2e-3)

    print("KERNEL_OK")
</pallas_src>

<mosaic_0001>
module attributes {stable_mosaic.version = 11 : i64} {
  func.func @_norm_qkv_kernel(%arg0: i32, %arg1: memref<16x32xf32, #tpu.memory_space<vmem>>, %arg2: memref<1x32xf32, #tpu.memory_space<vmem>>, %arg3: memref<32x32xf32, #tpu.memory_space<vmem>>, %arg4: memref<32x32xf32, #tpu.memory_space<vmem>>, %arg5: memref<32x32xf32, #tpu.memory_space<vmem>>, %arg6: memref<16x32xf32, #tpu.memory_space<vmem>>, %arg7: memref<16x32xf32, #tpu.memory_space<vmem>>, %arg8: memref<16x32xf32, #tpu.memory_space<vmem>>) attributes {dimension_semantics = [#tpu.dimension_semantics<arbitrary>], iteration_bounds = array<i64: 1>, scalar_prefetch = 0 : i64, scratch_operands = 0 : i64, tpu.core_type = #tpu.core_type<tc>, window_params = [{pipeline_mode = #tpu.pipeline_mode<synchronous>, transform_indices = @transform_0, window_bounds = array<i64: 16, 32>}, {pipeline_mode = #tpu.pipeline_mode<synchronous>, transform_indices = @transform_1, window_bounds = array<i64: 1, 32>}, {pipeline_mode = #tpu.pipeline_mode<synchronous>, transform_indices = @transform_2, window_bounds = array<i64: 32, 32>}, {pipeline_mode = #tpu.pipeline_mode<synchronous>, transform_indices = @transform_3, window_bounds = array<i64: 32, 32>}, {pipeline_mode = #tpu.pipeline_mode<synchronous>, transform_indices = @transform_4, window_bounds = array<i64: 32, 32>}, {pipeline_mode = #tpu.pipeline_mode<synchronous>, transform_indices = @transform_5, window_bounds = array<i64: 16, 32>}, {pipeline_mode = #tpu.pipeline_mode<synchronous>, transform_indices = @transform_6, window_bounds = array<i64: 16, 32>}, {pipeline_mode = #tpu.pipeline_mode<synchronous>, transform_indices = @transform_7, window_bounds = array<i64: 16, 32>}]} {
    %c0 = arith.constant 0 : index
    %c0_0 = arith.constant 0 : index
    %0 = vector.load %arg1[%c0, %c0_0] : memref<16x32xf32, #tpu.memory_space<vmem>>, vector<16x32xf32>
    %c0_1 = arith.constant 0 : index
    %c0_2 = arith.constant 0 : index
    %1 = vector.load %arg2[%c0_1, %c0_2] : memref<1x32xf32, #tpu.memory_space<vmem>>, vector<1x32xf32>
    %2 = arith.mulf %0, %0 : vector<16x32xf32>
    %cst = arith.constant dense<0.000000e+00> : vector<16xf32>
    %3 = vector.multi_reduction <add>, %2, %cst [1] : vector<16x32xf32> to vector<16xf32>
    %4 = vector.shape_cast %3 : vector<16xf32> to vector<16x1xf32>
    %5 = math.sqrt %4 : vector<16x1xf32>
    %cst_3 = arith.constant 5.65685415 : f32
    %6 = vector.broadcast %cst_3 : f32 to vector<1x32xf32>
    %7 = arith.mulf %6, %1 : vector<1x32xf32>
    %8 = vector.broadcast %7 : vector<1x32xf32> to vector<16x32xf32>
    %9 = arith.mulf %8, %0 : vector<16x32xf32>
    %cst_4 = arith.constant 1.1920929E-7 : f32
    %10 = vector.broadcast %cst_4 : f32 to vector<16x1xf32>
    %11 = arith.addf %5, %10 : vector<16x1xf32>
    %12 = vector.broadcast %11 : vector<16x1xf32> to vector<16x32xf32>
    %13 = arith.divf %9, %12 : vector<16x32xf32>
    %c0_5 = arith.constant 0 : index
    %c0_6 = arith.constant 0 : index
    %14 = vector.load %arg3[%c0_5, %c0_6] : memref<32x32xf32, #tpu.memory_space<vmem>>, vector<32x32xf32>
    %cst_7 = arith.constant dense<0.000000e+00> : vector<16x32xf32>
    %15 = tpu.matmul %13, %14, %cst_7 {dimension_numbers = #tpu.dot_dimension_numbers<[1], [0], [0], [1], [0, 0, 1, 1], [], []>} : vector<16x32xf32>, vector<32x32xf32>, vector<16x32xf32> -> vector<16x32xf32>
    %c0_8 = arith.constant 0 : index
    %c0_9 = arith.constant 0 : index
    %16 = vector.load %arg6[%c0_8, %c0_9] : memref<16x32xf32, #tpu.memory_space<vmem>>, vector<16x32xf32>
    tpu.vector_store %arg6[%c0_8, %c0_9], %15 {strides = array<i32>} : memref<16x32xf32, #tpu.memory_space<vmem>>, vector<16x32xf32>,
    %c0_10 = arith.constant 0 : index
    %c0_11 = arith.constant 0 : index
    %17 = vector.load %arg4[%c0_10, %c0_11] : memref<32x32xf32, #tpu.memory_space<vmem>>, vector<32x32xf32>
    %cst_12 = arith.constant dense<0.000000e+00> : vector<16x32xf32>
    %18 = tpu.matmul %13, %17, %cst_12 {dimension_numbers = #tpu.dot_dimension_numbers<[1], [0], [0], [1], [0, 0, 1, 1], [], []>} : vector<16x32xf32>, vector<32x32xf32>, vector<16x32xf32> -> vector<16x32xf32>
    %c0_13 = arith.constant 0 : index
    %c0_14 = arith.constant 0 : index
    %19 = vector.load %arg7[%c0_13, %c0_14] : memref<16x32xf32, #tpu.memory_space<vmem>>, vector<16x32xf32>
    tpu.vector_store %arg7[%c0_13, %c0_14], %18 {strides = array<i32>} : memref<16x32xf32, #tpu.memory_space<vmem>>, vector<16x32xf32>,
    %c0_15 = arith.constant 0 : index
    %c0_16 = arith.constant 0 : index
    %20 = vector.load %arg5[%c0_15, %c0_16] : memref<32x32xf32, #tpu.memory_space<vmem>>, vector<32x32xf32>
    %cst_17 = arith.constant dense<0.000000e+00> : vector<16x32xf32>
    %21 = tpu.matmul %13, %20, %cst_17 {dimension_numbers = #tpu.dot_dimension_numbers<[1], [0], [0], [1], [0, 0, 1, 1], [], []>} : vector<16x32xf32>, vector<32x32xf32>, vector<16x32xf32> -> vector<16x32xf32>
    %c0_18 = arith.constant 0 : index
    %c0_19 = arith.constant 0 : index
    %22 = vector.load %arg8[%c0_18, %c0_19] : memref<16x32xf32, #tpu.memory_space<vmem>>, vector<16x32xf32>
    tpu.vector_store %arg8[%c0_18, %c0_19], %21 {strides = array<i32>} : memref<16x32xf32, #tpu.memory_space<vmem>>, vector<16x32xf32>,
    return
  }
  func.func @transform_0(%arg0: i32) -> (i32, i32) {
    %c0_i32 = arith.constant 0 : i32
    %c0_i32_0 = arith.constant 0 : i32
    %c0_i32_1 = arith.constant 0 : i32
    return %c0_i32, %c0_i32_0 : i32, i32
  }
  func.func @transform_1(%arg0: i32) -> (i32, i32) {
    %c0_i32 = arith.constant 0 : i32
    %c0_i32_0 = arith.constant 0 : i32
    %c0_i32_1 = arith.constant 0 : i32
    return %c0_i32, %c0_i32_0 : i32, i32
  }
  func.func @transform_2(%arg0: i32) -> (i32, i32) {
    %c0_i32 = arith.constant 0 : i32
    %c0_i32_0 = arith.constant 0 : i32
    %c0_i32_1 = arith.constant 0 : i32
    return %c0_i32, %c0_i32_0 : i32, i32
  }
  func.func @transform_3(%arg0: i32) -> (i32, i32) {
    %c0_i32 = arith.constant 0 : i32
    %c0_i32_0 = arith.constant 0 : i32
    %c0_i32_1 = arith.constant 0 : i32
    return %c0_i32, %c0_i32_0 : i32, i32
  }
  func.func @transform_4(%arg0: i32) -> (i32, i32) {
    %c0_i32 = arith.constant 0 : i32
    %c0_i32_0 = arith.constant 0 : i32
    %c0_i32_1 = arith.constant 0 : i32
    return %c0_i32, %c0_i32_0 : i32, i32
  }
  func.func @transform_5(%arg0: i32) -> (i32, i32) {
    %c0_i32 = arith.constant 0 : i32
    %c0_i32_0 = arith.constant 0 : i32
    %c0_i32_1 = arith.constant 0 : i32
    return %c0_i32, %c0_i32_0 : i32, i32
  }
  func.func @transform_6(%arg0: i32) -> (i32, i32) {
    %c0_i32 = arith.constant 0 : i32
    %c0_i32_0 = arith.constant 0 : i32
    %c0_i32_1 = arith.constant 0 : i32
    return %c0_i32, %c0_i32_0 : i32, i32
  }
  func.func @transform_7(%arg0: i32) -> (i32, i32) {
    %c0_i32 = arith.constant 0 : i32
    %c0_i32_0 = arith.constant 0 : i32
    %c0_i32_1 = arith.constant 0 : i32
    return %c0_i32, %c0_i32_0 : i32, i32
  }
}

</mosaic_0001>

<bundles_post_ra>
// kernel: tpu_custom_call.1
= control target key start
LH: loop header
LB: loop body
LE: loop exit
PB: predicated region body
PF: predicated region fallthrough
CT: control target
= control target key end

     0   :  { %13 = vsyncpa [#allocation3], 0  ;;  %s874_s0 = inlined_call_operand.hbm [shape: f32[16,32], index: 0, kind: input, shape index: {}]   ;;  %s875_s1 = inlined_call_operand.vmem [shape: f32[1,32], index: 1, kind: input, shape index: {}]   ;;  %s876_s2 = inlined_call_operand.hbm [shape: f32[32,32], index: 2, kind: input, shape index: {}]   ;;  %s877_s3 = inlined_call_operand.hbm [shape: f32[32,32], index: 3, kind: input, shape index: {}]   ;;  %s878_s4 = inlined_call_operand.hbm [shape: f32[32,32], index: 4, kind: input, shape index: {}]   ;;  %s879_s5 = inlined_call_operand.hbm [shape: f32[16,32], index: 5, kind: output, shape index: {0}]   ;;  %s880_s6 = inlined_call_operand.hbm [shape: f32[16,32], index: 6, kind: output, shape index: {1}]   ;;  %s881_s7 = inlined_call_operand.hbm [shape: f32[16,32], index: 7, kind: output, shape index: {2}]  }
   0x1   :  { %14 = vsyncpa [#allocation6], 0 }
   0x2   :  { %15 = vsyncpa [#allocation9], 0 }
   0x3   :  { %16 = vsyncpa [#allocation4], 0 }
   0x4   :  { %17 = vsyncpa [#allocation12], 0  ;;  %s682_s24 = smov [#allocation5]   ;;  %s683_s26 = smov [#allocation2]  }
   0x5   :  { %s37_s25 = sshll.u32 %s682_s24, 4  ;;  %s23_s27 = sshll.u32 %s683_s26, 4  ;;  %s38_s25 = int_to_ptr.vmem [resolvable:$true] %s37_s25  ;;  %s731_s27 = int_to_ptr.vmem [resolvable:$true] %s23_s27 }
   0x6   :  { %s518_s30 = scalar_lea.hbm %s876_s2, 512 }
   0x7   :  { %p519_p0 = scmp.ne.s32.totalorder %s876_s2, %s518_s30  ;;  %p522_p1 = scmp.lt.u32.totalorder %s518_s30, %s876_s2 }
   0x9   :  { %p524_p2 = pnand %p522_p1, %p519_p0 }
   0xb   :  { %527 = shalt.err (!%p524_p2)
}
   0xc   :  { %s528_s12 = scalar_lea.vmem %s38_s25, 512  ;;  %p533_p4 = scmp.lt.s32.totalorder %s38_s25, %s38_s25 }
   0xd   :  { %p529_p3 = scmp.ne.s32.totalorder %s38_s25, %s528_s12  ;;  %p534_p5 = scmp.lt.s32.totalorder %s528_s12, %s528_s12 }
   0xf   :  { %p535_p6 = por %p534_p5, %p533_p4 }
  0x11   :  { %p536_p7 = pnand %p535_p6, %p529_p3 }
  0x13   :  { %539 = shalt.err (!%p536_p7)
}
  0x14   :  { %s684_s13 = smov 128   ;;  %s685_s14 = smov 8  }
  0x15   :  { %43 = dma.hbm_to_vmem [thread:$0]  %s876_s2, 512, %s38_s25, [#allocation6], %s684_s13, %s684_s13, %s685_s14  }
  0x16   :  { %s540_s19 = scalar_lea.hbm %s874_s0, 256 }
  0x17   :  { %p541_p8 = scmp.ne.s32.totalorder %s874_s0, %s540_s19  ;;  %p544_p9 = scmp.lt.u32.totalorder %s540_s19, %s874_s0 }
  0x19   :  { %p546_p10 = pnand %p544_p9, %p541_p8 }
  0x1b   :  { %549 = shalt.err (!%p546_p10)
}
  0x1c   :  { %s550_s24 = scalar_lea.vmem %s731_s27, 256  ;;  %p555_p12 = scmp.lt.s32.totalorder %s731_s27, %s731_s27 }
  0x1d   :  { %p551_p11 = scmp.ne.s32.totalorder %s731_s27, %s550_s24  ;;  %p556_p13 = scmp.lt.s32.totalorder %s550_s24, %s550_s24 }
  0x1f   :  { %p557_p0 = por %p556_p13, %p555_p12 }
  0x21   :  { %p558_p1 = pnand %p557_p0, %p551_p11 }
  0x23   :  { %561 = shalt.err (!%p558_p1)
}
  0x24   :  { %29 = dma.hbm_to_vmem [thread:$0]  %s874_s0, 256, %s731_s27, [#allocation3], %s684_s13, %s684_s13, %s685_s14  }
  0x25   :  { %s686_s26 = smov [#allocation7]   ;;  %s687_s29 = smov [#allocation8]  }
  0x26   :  { %s49_s28 = sshll.u32 %s686_s26, 4  ;;  %s61_s30 = sshll.u32 %s687_s29, 4  ;;  %s50_s28 = int_to_ptr.vmem [resolvable:$true] %s49_s28  ;;  %s768_s30 = int_to_ptr.vmem [resolvable:$true] %s61_s30 }
  0x27   :  { %s562_s10 = scalar_lea.hbm %s877_s3, 512 }
  0x28   :  { %p563_p2 = scmp.ne.s32.totalorder %s877_s3, %s562_s10  ;;  %p566_p3 = scmp.lt.u32.totalorder %s562_s10, %s877_s3 }
  0x2a   :  { %p568_p4 = pnand %p566_p3, %p563_p2 }
  0x2c   :  { %571 = shalt.err (!%p568_p4)
}
  0x2d   :  { %s572_s0 = scalar_lea.vmem %s50_s28, 512  ;;  %p577_p6 = scmp.lt.s32.totalorder %s50_s28, %s50_s28 }
  0x2e   :  { %p573_p5 = scmp.ne.s32.totalorder %s50_s28, %s572_s0  ;;  %p578_p7 = scmp.lt.s32.totalorder %s572_s0, %s572_s0 }
  0x30   :  { %p579_p8 = por %p578_p7, %p577_p6 }
  0x32   :  { %p580_p9 = pnand %p579_p8, %p573_p5 }
  0x34   :  { %583 = shalt.err (!%p580_p9)
}
  0x35   :  { %55 = dma.hbm_to_vmem [thread:$0]  %s877_s3, 512, %s50_s28, [#allocation6], %s684_s13, %s684_s13, %s685_s14  }
  0x36   :  { %s584_s20 = scalar_lea.hbm %s878_s4, 512 }
  0x37   :  { %p585_p10 = scmp.ne.s32.totalorder %s878_s4, %s584_s20  ;;  %p588_p11 = scmp.lt.u32.totalorder %s584_s20, %s878_s4 }
  0x39   :  { %p590_p12 = pnand %p588_p11, %p585_p10 }
  0x3b   :  { %593 = shalt.err (!%p590_p12)
}
  0x3c   :  { %s594_s2 = scalar_lea.vmem %s768_s30, 512  ;;  %p599_p0 = scmp.lt.s32.totalorder %s768_s30, %s768_s30 }
  0x3d   :  { %p595_p13 = scmp.ne.s32.totalorder %s768_s30, %s594_s2  ;;  %p600_p1 = scmp.lt.s32.totalorder %s594_s2, %s594_s2 }
  0x3f   :  { %p601_p2 = por %p600_p1, %p599_p0 }
  0x41   :  { %p602_p3 = pnand %p601_p2, %p595_p13 }
  0x43   :  { %605 = shalt.err (!%p602_p3)
}
  0x44   :  { %67 = dma.hbm_to_vmem [thread:$0]  %s878_s4, 512, %s768_s30, [#allocation9], %s684_s13, %s684_s13, %s685_s14  }
  0x45   :  { %672 = dma.done.wait [#allocation3], 256  }
  0x46   :  { %673 = vsyncadd [#allocation3], 4294967040 }
  0x47   :  { %674 = dma.done.wait [#allocation6], 1024  }
  0x48   :  { %675 = vsyncadd [#allocation6], 4294966272 }
  0x49   :  { %676 = dma.done.wait [#allocation9], 512  }
  0x4a   :  { %677 = vsyncadd [#allocation9], 4294966784  ;;  %v80_v0 = vld [vmem:[#allocation2] sm:$0xff]  ;;  %vm85_vm0 = vcmask 261120   ;;  %v81_v1 = vld [vmem:[#allocation2 + $0x8] sm:$0xff]  ;;  %v108_v23 = vlaneseq  ;;  %s689_s29 = smov [#allocation10]  }
  0x4b   :  { %v83_v2 = vmul.f32 %v80_v0, %v80_v0  ;;  %v84_v3 = vmul.f32 %v81_v1, %v81_v1  ;;  %v121_v6 = vld [vmem:[#allocation5] sm:$0xff]  ;;  %v122_v7 = vld [vmem:[#allocation5 + $0x8] sm:$0xff]  ;;  %v123_v11 = vld [vmem:[#allocation5 + $0x10] sm:$0xff]  ;;  %s375_s30 = sshll.u32 %s689_s29, 4  ;;  %s818_s30 = int_to_ptr.vmem [resolvable:$true] %s375_s30 }
  0x4c   :  { %v208_v8 = vld [vmem:[#allocation7] sm:$0xff]  ;;  %v477_v9 = vpack.c.bf16 %v122_v7, %v121_v6  ;;  %v209_v10 = vld [vmem:[#allocation7 + $0x8] sm:$0xff]  ;;  %v124_v12 = vld [vmem:[#allocation5 + $0x18] sm:$0xff]  ;;  %v109_v26 = vshrl.u32 %v108_v23, 7 }
  0x4d   :  { %v86_v4 = vsel %vm85_vm0, %v83_v2, 0.0  ;;  %v89_v5 = vsel %vm85_vm0, %v84_v3, 0.0  ;;  %v485_v13 = vpack.c.bf16 %v209_v10, %v208_v8  ;;  %v481_v14 = vpack.c.bf16 %v124_v12, %v123_v11  ;;  %v210_v15 = vld [vmem:[#allocation7 + $0x10] sm:$0xff]  ;;  %v211_v16 = vld [vmem:[#allocation7 + $0x18] sm:$0xff]  ;;  %v289_v18 = vld [vmem:[#allocation8] sm:$0xff] }
  0x4e   :  { %87 = vadd.xlane.f32.xlu0 %v86_v4  ;;  %478 = vmatprep.subr.bf16.mxu0 %v477_v9  ;;  %v489_v17 = vpack.c.bf16 %v211_v16, %v210_v15  ;;  %v290_v19 = vld [vmem:[#allocation8 + $0x8] sm:$0xff]  ;;  %v82_v28 = vld [vmem:[%s875_s1] sm:$0x1]  ;;  %v110_v35 = vsub.s32 0, %v109_v26  ;;  %v292_v46 = vld [vmem:[#allocation8 + $0x18] sm:$0xff]  ;;  %s688_s1 = smov [#allocation11]  }
  0x4f   :  { %480 = vmatpush3.bf16.msra.mxu0 %v477_v9  ;;  %486 = vmatprep.subr.bf16.mxu1 %v485_v13  ;;  %v493_v20 = vpack.c.bf16 %v290_v19, %v289_v18  ;;  %v106_v34 = vmul.f32 5.656854, %v82_v28  ;;  %v291_v45 = vld [vmem:[#allocation8 + $0x10] sm:$0xff]  ;;  %s387_s28 = sshll.u32 %s688_s1, 4  ;;  %s388_s28 = int_to_ptr.vmem [resolvable:$true] %s387_s28 }
  0x50   :  { %488 = vmatpush3.bf16.msra.mxu1 %v485_v13  ;;  %482 = vmatprep.subr.bf16.mxu0 %v481_v14  ;;  %v497_v49 = vpack.c.bf16 %v292_v46, %v291_v45  ;;  %s606_s8 = scalar_lea.vmem %s388_s28, 256  ;;  %p611_p5 = scmp.lt.s32.totalorder %s388_s28, %s388_s28 }
  0x51   :  { %490 = vmatprep.subr.bf16.mxu1 %v489_v17  ;;  %v111_v40 = vrot.slane %v106_v34, %v110_v35  ;;  %p607_p4 = scmp.ne.s32.totalorder %s388_s28, %s606_s8  ;;  %p612_p6 = scmp.lt.s32.totalorder %s606_s8, %s606_s8 }
  0x52   :  { %90 = vadd.xlane.f32.xlu0 %v89_v5 }
  0x53   :  { %484 = vmatpush3.bf16.msra.mxu0 %v481_v14  ;;  %v113_v41 = vmul.f32 %v111_v40, %v80_v0  ;;  %v114_v43 = vmul.f32 %v111_v40, %v81_v1  ;;  %p613_p7 = por %p612_p6, %p611_p5 }
  0x54   :  { %492 = vmatpush3.bf16.msra.mxu1 %v489_v17  ;;  %494 = vmatprep.subr.bf16.mxu0 %v493_v20 }
  0x55   :  { %p614_p8 = pnand %p613_p7, %p607_p4 }
  0xdb   :  { %v88_v21 = vpop.xlane.xlu0 %87 }
  0xdc   :  { %510 = vrsqrt.f32 %v88_v21  ;;  %vm94_vm1 = vcmp.eq.f32.partialorder %v88_v21, inf  ;;  %v97_v27 = vand.u32 2147483648, %v88_v21  ;;  %vm96_vm2 = vcmp.eq.f32.partialorder %v88_v21, 0.0 }
  0xdf   :  { %v91_v22 = vpop.xlane.xlu0 %90 }
  0xe0   :  { %512 = vrsqrt.f32 %v91_v22  ;;  %vm101_vm3 = vcmp.eq.f32.partialorder %v91_v22, inf  ;;  %v104_v36 = vand.u32 2147483648, %v91_v22  ;;  %vm103_vm4 = vcmp.eq.f32.partialorder %v91_v22, 0.0 }
  0xe6   :  { %v511_v24 = vpop.eup %510 }
  0xe7   :  { %v93_v25 = vmul.f32 %v511_v24, %v88_v21 }
  0xe9   :  { %v95_v29 = vsel %vm94_vm1, %v88_v21, %v93_v25 }
  0xea   :  { %v513_v30 = vpop.eup %512  ;;  %v98_v31 = vsel %vm96_vm2, %v97_v27, %v95_v29 }
  0xeb   :  { %v115_v32 = vadd.f32 1.1920929e-07, %v98_v31  ;;  %v100_v33 = vmul.f32 %v513_v30, %v91_v22 }
  0xed   :  { %514 = vrcp.f32 %v115_v32  ;;  %v102_v37 = vsel %vm101_vm3, %v91_v22, %v100_v33 }
  0xee   :  { %v105_v38 = vsel %vm103_vm4, %v104_v36, %v102_v37 }
  0xef   :  { %v116_v39 = vadd.f32 1.1920929e-07, %v105_v38 }
  0xf1   :  { %516 = vrcp.f32 %v116_v39 }
  0xf7   :  { %v515_v42 = vpop.eup %514 }
  0xf8   :  { %v118_v44 = vmul.f32 %v515_v42, %v113_v41 }
  0xfa   :  { %452 = vmatprep.mubr.msk.f32.mxu0 %vm85_vm0, %v118_v44  ;;  %463 = vmatprep.mubr.msk.f32.mxu1 %vm85_vm0, %v118_v44 }
  0xfb   :  { %v517_v47 = vpop.eup %516 }
  0xfc   :  { %v120_v48 = vmul.f32 %v517_v47, %v114_v43 }
  0xfe   :  { %453 = vmatmul.mubr.msk.f32.vlgmr.msra.gmra.mrb[0].mxu0 %vm85_vm0, %v120_v48  ;;  %464 = vmatmul.mubr.msk.f32.vlgmr.msra.gmra.mrb[0].mxu1 %vm85_vm0, %v120_v48 }
  0xff   :  { %496 = vmatpush3.bf16.msra.mxu0 %v493_v20  ;;  %474 = vmatprep.mubr.msk.f32.mxu0 %vm85_vm0, %v118_v44 }
 0x100   :  { %498 = vmatprep.subr.bf16.mxu0 %v497_v49 }
 0x103   :  { %500 = vmatpush3.bf16.msra.mxu0 %v497_v49 }
 0x106   :  { %475 = vmatmul.mubr.msk.f32.vlgmr.msra.gmra.mrb[2].mxu0 %vm85_vm0, %v120_v48 }
 0x1d1   :  { %v454_v50 = vpop.f32.mrb[0].mxu0  ;;  %v465_v51 = vpop.f32.mrb[0].mxu1 }
 0x1d2   :  { %207 = vst.msk [vmem:[#allocation10 + $0x8] sm:$0xff] %vm85_vm0, %v454_v50  ;;  %288 = vst.msk [vmem:[#allocation11 + $0x8] sm:$0xff] %vm85_vm0, %v465_v51  ;;  %v197_v52 = vpop.f32.mrb[1].mxu0  ;;  %v278_v53 = vpop.f32.mrb[1].mxu1 }
 0x1d3   :  { %206 = vst.msk [vmem:[#allocation10] sm:$0xff] %vm85_vm0, %v197_v52  ;;  %287 = vst.msk [vmem:[#allocation11] sm:$0xff] %vm85_vm0, %v278_v53 }
 0x1d4   :  { %617 = shalt.err (!%p614_p8)
}
 0x1d5   :  { %s618_s11 = scalar_lea.hbm %s880_s6, 256 }
 0x1d6   :  { %p619_p9 = scmp.ne.s32.totalorder %s880_s6, %s618_s11  ;;  %p622_p10 = scmp.lt.u32.totalorder %s618_s11, %s880_s6 }
 0x1d8   :  { %p624_p11 = pnand %p622_p10, %p619_p9 }
 0x1da   :  { %627 = shalt.err (!%p624_p11)
}
 0x1db   :  { %393 = dma.vmem_to_hbm [thread:$0]  %s388_s28, 256, %s880_s6, [#allocation12], %s684_s13, %s684_s13, %s685_s14  }
 0x1dc   :  { %s628_s18 = scalar_lea.vmem %s818_s30, 256  ;;  %p633_p13 = scmp.lt.s32.totalorder %s818_s30, %s818_s30 }
 0x1dd   :  { %p629_p12 = scmp.ne.s32.totalorder %s818_s30, %s628_s18  ;;  %p634_p0 = scmp.lt.s32.totalorder %s628_s18, %s628_s18 }
 0x1df   :  { %p635_p1 = por %p634_p0, %p633_p13 }
 0x1e1   :  { %p636_p2 = pnand %p635_p1, %p629_p12 }
 0x1e3   :  { %639 = shalt.err (!%p636_p2)
}
 0x1e4   :  { %s640_s21 = scalar_lea.hbm %s879_s5, 256 }
 0x1e5   :  { %p641_p3 = scmp.ne.s32.totalorder %s879_s5, %s640_s21  ;;  %p644_p4 = scmp.lt.u32.totalorder %s640_s21, %s879_s5 }
 0x1e7   :  { %p646_p5 = pnand %p644_p4, %p641_p3 }
 0x1e9   :  { %649 = shalt.err (!%p646_p5)
}
 0x1ea   :  { %381 = dma.vmem_to_hbm [thread:$0]  %s818_s30, 256, %s879_s5, [#allocation4], %s684_s13, %s684_s13, %s685_s14   ;;  %v476_v54 = vpop.f32.mrb[2].mxu0 }
 0x1eb   :  { %s690_s25 = smov [#allocation13]   ;;  %369 = vst.msk [vmem:[#allocation13 + $0x8] sm:$0xff] %vm85_vm0, %v476_v54  ;;  %v359_v55 = vpop.f32.mrb[3].mxu0 }
 0x1ec   :  { %s399_s4 = sshll.u32 %s690_s25, 4  ;;  %368 = vst.msk [vmem:[#allocation13] sm:$0xff] %vm85_vm0, %v359_v55  ;;  %s400_s4 = int_to_ptr.vmem [resolvable:$true] %s399_s4 }
 0x1ed   :  { %s650_s26 = scalar_lea.vmem %s400_s4, 256  ;;  %p655_p7 = scmp.lt.s32.totalorder %s400_s4, %s400_s4 }
 0x1ee   :  { %p651_p6 = scmp.ne.s32.totalorder %s400_s4, %s650_s26  ;;  %p656_p8 = scmp.lt.s32.totalorder %s650_s26, %s650_s26 }
 0x1f0   :  { %p657_p9 = por %p656_p8, %p655_p7 }
 0x1f2   :  { %p658_p10 = pnand %p657_p9, %p651_p6 }
 0x1f4   :  { %661 = shalt.err (!%p658_p10)
}
 0x1f5   :  { %s662_s5 = scalar_lea.hbm %s881_s7, 256 }
 0x1f6   :  { %p663_p11 = scmp.ne.s32.totalorder %s881_s7, %s662_s5  ;;  %p666_p12 = scmp.lt.u32.totalorder %s662_s5, %s881_s7 }
 0x1f8   :  { %p668_p13 = pnand %p666_p12, %p663_p11 }
 0x1fa   :  { %671 = shalt.err (!%p668_p13)
}
 0x1fb   :  { %405 = dma.vmem_to_hbm [thread:$0]  %s400_s4, 256, %s881_s7, [#allocation12], %s684_s13, %s684_s13, %s685_s14  }
 0x1fc   :  { %678 = dma.done.wait [#allocation4], 256  }
 0x1fd   :  { %679 = vsyncadd [#allocation4], 4294967040 }
 0x1fe   :  { %680 = dma.done.wait [#allocation12], 512  }
 0x1ff   :  { %681 = vsyncadd [#allocation12], 4294966784 }
 0x200   :  { %415 = vsyncpa [#allocation3], 1 }
 0x201   :  { %416 = vsyncpa [#allocation6], 1 }
 0x202   :  { %417 = vsyncpa [#allocation9], 1 }
 0x203   :  { %418 = vsyncpa [#allocation4], 1 }
 0x204   :  { %419 = vsyncpa [#allocation12], 1 }

</bundles_post_ra>
